<compile_context>
chip_gen: v7x
topology: tpu7x:2x2x1
jax: 0.10.0
libtpu: 0.0.40
codegen_flags: <defaults>
</compile_context>

<pallas_src>
import functools

import jax
import jax.numpy as jnp
from jax.experimental import pallas as pl
from jax.experimental.pallas import tpu as pltpu

NEG_SLOPE = 0.01  # nn.LeakyReLU() default negative_slope
# maximum(y, slope*y) == LeakyReLU(y) only for 0 <= slope <= 1.
assert 0.0 <= NEG_SLOPE <= 1.0

LANE = 128  # lane width of a vreg


def _round_up(x, m):
    return -(-x // m) * m


def dnn8_kernel(x_ref, w_ref, b_ref, o_ref, *, n_layers, out_rows):
    """Fused forward, transposed layout (batch on the lane axis).

    x_ref: (pad_dim, tb) bf16 activations (zero-padded feature rows / batch cols).
    w_ref: (L, pad_dim, pad_dim) bf16 weight stack, PyTorch (out, in) layout.
    b_ref: (L, pad_dim, 1) f32 bias columns (broadcast across lanes).
    o_ref: (out_rows, tb) f32 output block (valid rows = out_size).
    """
    h = x_ref[...]  # bf16
    for i in range(n_layers - 1):
        y = jnp.dot(w_ref[i], h, preferred_element_type=jnp.float32) + b_ref[i]
        y = jnp.maximum(y, NEG_SLOPE * y)   # LeakyReLU, single vmax (f32: v5e-safe)
        h = y.astype(jnp.bfloat16)
    # Final layer: only the valid output rows are computed and stored.
    w_last = w_ref[n_layers - 1][:out_rows, :]
    b_last = b_ref[n_layers - 1][:out_rows, :]
    o_ref[...] = jnp.dot(w_last, h, preferred_element_type=jnp.float32) + b_last


def pack_params(params):
    """Pack per-layer (W_(out,in), b_(out,)) into padded stacks.

    Call ONCE outside the hot path; the packed arrays are reused every call.
    Padded rows/cols are zero so they contribute nothing to valid lanes.
    """
    n_layers = len(params)
    pad_dim = _round_up(max(max(w.shape) for w, _ in params), 8)
    w_packed = jnp.zeros((n_layers, pad_dim, pad_dim), jnp.bfloat16)
    b_packed = jnp.zeros((n_layers, pad_dim, 1), jnp.float32)
    for i, (w, b) in enumerate(params):
        w_packed = w_packed.at[i, :w.shape[0], :w.shape[1]].set(
            w.astype(jnp.bfloat16))
        b_packed = b_packed.at[i, :b.shape[0], 0].set(b.astype(jnp.float32))
    return w_packed, b_packed


@functools.partial(jax.jit, static_argnames=("out_size", "batch_tile"))
def dnn8_forward(x, w_packed, b_packed, *, out_size, batch_tile=4096):
    """x: (B, input_size) f32; packed params from pack_params(). Returns (B, out_size)."""
    B, in_size = x.shape
    n_layers, pad_dim, _ = w_packed.shape
    out_rows = _round_up(out_size, 8)

    # Batch sits on the lane axis -> tiles are multiples of 128 lanes.
    b_req = _round_up(B, LANE)
    if b_req <= LANE:
        tb = b_req
    else:
        # For large batches guarantee >= 2 grid programs so ("parallel",) can
        # use both v7x TensorCores; cap the tile at batch_tile lanes.
        half = _round_up(-(-b_req // 2), LANE)
        tb = min(_round_up(batch_tile, LANE), half)
    b_pad = _round_up(B, tb)

    # Transpose + zero-pad x once, in bf16 (half the activation DMA bytes).
    # Batch-pad columns produce bias/LeakyReLU garbage that is sliced off at
    # the end -- do not "optimize" that slice away.
    x_p = jnp.zeros((pad_dim, b_pad), jnp.bfloat16)
    x_p = x_p.at[:in_size, :B].set(x.astype(jnp.bfloat16).T)

    kernel = functools.partial(dnn8_kernel, n_layers=n_layers, out_rows=out_rows)
    out_t = pl.pallas_call(
        kernel,
        out_shape=jax.ShapeDtypeStruct((out_rows, b_pad), jnp.float32),
        grid=(b_pad // tb,),
        in_specs=[
            pl.BlockSpec((pad_dim, tb), lambda i: (0, i)),
            # Constant block indices -> weights/biases stay VMEM-resident.
            pl.BlockSpec((n_layers, pad_dim, pad_dim), lambda i: (0, 0, 0)),
            pl.BlockSpec((n_layers, pad_dim, 1), lambda i: (0, 0, 0)),
        ],
        out_specs=pl.BlockSpec((out_rows, tb), lambda i: (0, i)),
        compiler_params=pltpu.CompilerParams(
            dimension_semantics=("parallel",)),
    )(x_p, w_packed, b_packed)
    return out_t[:out_size, :B].T


def init_params(key, sizes):
    """PyTorch-Linear-style init; weights stored in native (out, in) layout."""
    params = []
    for i in range(len(sizes) - 1):
        fan_in, fan_out = sizes[i], sizes[i + 1]
        key, kw, kb = jax.random.split(key, 3)
        bound = 1.0 / jnp.sqrt(fan_in)
        w = jax.random.uniform(kw, (fan_out, fan_in), jnp.float32, -bound, bound)
        b = jax.random.uniform(kb, (fan_out,), jnp.float32, -bound, bound)
        params.append((w, b))
    return params


def reference_forward_bf16(x, params):
    """Reference matching the kernel's math (bf16 operands, f32 accumulate)."""
    h = x.astype(jnp.bfloat16)
    for idx, (w, b) in enumerate(params):
        y = jnp.dot(h, w.astype(jnp.bfloat16).T,
                    preferred_element_type=jnp.float32) + b
        if idx < len(params) - 1:
            y = jnp.maximum(y, NEG_SLOPE * y)
            h = y.astype(jnp.bfloat16)
        else:
            h = y
    return h


def reference_forward_f32(x, params):
    """Full-f32 reference of the original module semantics."""
    h = x
    for idx, (w, b) in enumerate(params):
        y = h @ w.T + b
        h = jnp.maximum(y, NEG_SLOPE * y) if idx < len(params) - 1 else y
    return h


if __name__ == "__main__":
    key = jax.random.PRNGKey(0)

    # Small shapes consistent with the module's constructor.
    batch = 8
    input_size = 16
    hidden = [32] * 8
    out_size = 8
    sizes = [input_size] + hidden + [out_size]

    key, kx = jax.random.split(key)
    x = jax.random.normal(kx, (batch, input_size), jnp.float32)
    params = init_params(key, sizes)

    # Pack once (outside the hot path), reuse across calls.
    w_packed, b_packed = pack_params(params)

    y = dnn8_forward(x, w_packed, b_packed, out_size=out_size)
    jax.block_until_ready(y)
    assert y.shape == (batch, out_size)

    # Tight check against a reference using the same bf16-operand matmul.
    y_ref_bf16 = reference_forward_bf16(x, params)
    assert jnp.allclose(y, y_ref_bf16, atol=5e-4, rtol=5e-4), (
        jnp.max(jnp.abs(y - y_ref_bf16)))

    # Loose check against the original full-f32 module semantics.
    y_ref_f32 = reference_forward_f32(x, params)
    assert jnp.allclose(y, y_ref_f32, atol=5e-3, rtol=5e-2), (
        jnp.max(jnp.abs(y - y_ref_f32)))

    print("KERNEL_OK")
</pallas_src>

<mosaic_0001>
module attributes {stable_mosaic.version = 11 : i64} {
  func.func @dnn8_kernel(%arg0: i32, %arg1: memref<32x128xbf16, #tpu.memory_space<vmem>>, %arg2: memref<9x32x32xbf16, #tpu.memory_space<vmem>>, %arg3: memref<9x32x1xf32, #tpu.memory_space<vmem>>, %arg4: memref<8x128xf32, #tpu.memory_space<vmem>>) attributes {dimension_semantics = [#tpu.dimension_semantics<parallel>], iteration_bounds = array<i64: 1>, scalar_prefetch = 0 : i64, scratch_operands = 0 : i64, tpu.core_type = #tpu.core_type<tc>, window_params = [{transform_indices = @transform_0, window_bounds = array<i64: 32, 128>}, {pipeline_mode = #tpu.pipeline_mode<synchronous>, transform_indices = @transform_1, window_bounds = array<i64: 9, 32, 32>}, {pipeline_mode = #tpu.pipeline_mode<synchronous>, transform_indices = @transform_2, window_bounds = array<i64: 9, 32, 1>}, {transform_indices = @transform_3, window_bounds = array<i64: 8, 128>}]} {
    %c0 = arith.constant 0 : index
    %c0_0 = arith.constant 0 : index
    %0 = vector.load %arg1[%c0, %c0_0] : memref<32x128xbf16, #tpu.memory_space<vmem>>, vector<32x128xbf16>
    %c0_1 = arith.constant 0 : index
    %c0_2 = arith.constant 0 : index
    %c0_3 = arith.constant 0 : index
    %1 = vector.load %arg2[%c0_1, %c0_2, %c0_3] : memref<9x32x32xbf16, #tpu.memory_space<vmem>>, vector<1x32x32xbf16>
    %2 = vector.shape_cast %1 : vector<1x32x32xbf16> to vector<32x32xbf16>
    %cst = arith.constant dense<0.000000e+00> : vector<32x128xf32>
    %3 = tpu.matmul %2, %0, %cst {dimension_numbers = #tpu.dot_dimension_numbers<[1], [0], [0], [1], [0, 0, 1, 1], [], []>} : vector<32x32xbf16>, vector<32x128xbf16>, vector<32x128xf32> -> vector<32x128xf32>
    %c0_4 = arith.constant 0 : index
    %c0_5 = arith.constant 0 : index
    %c0_6 = arith.constant 0 : index
    %4 = vector.load %arg3[%c0_4, %c0_5, %c0_6] : memref<9x32x1xf32, #tpu.memory_space<vmem>>, vector<1x32x1xf32>
    %5 = vector.shape_cast %4 : vector<1x32x1xf32> to vector<32x1xf32>
    %6 = vector.broadcast %5 : vector<32x1xf32> to vector<32x128xf32>
    %7 = arith.addf %3, %6 : vector<32x128xf32>
    %cst_7 = arith.constant 0.00999999977 : f32
    %8 = vector.broadcast %cst_7 : f32 to vector<32x128xf32>
    %9 = arith.mulf %8, %7 : vector<32x128xf32>
    %10 = arith.maximumf %7, %9 : vector<32x128xf32>
    %11 = arith.truncf %10 : vector<32x128xf32> to vector<32x128xbf16>
    %c1 = arith.constant 1 : index
    %c0_8 = arith.constant 0 : index
    %c0_9 = arith.constant 0 : index
    %12 = vector.load %arg2[%c1, %c0_8, %c0_9] : memref<9x32x32xbf16, #tpu.memory_space<vmem>>, vector<1x32x32xbf16>
    %13 = vector.shape_cast %12 : vector<1x32x32xbf16> to vector<32x32xbf16>
    %cst_10 = arith.constant dense<0.000000e+00> : vector<32x128xf32>
    %14 = tpu.matmul %13, %11, %cst_10 {dimension_numbers = #tpu.dot_dimension_numbers<[1], [0], [0], [1], [0, 0, 1, 1], [], []>} : vector<32x32xbf16>, vector<32x128xbf16>, vector<32x128xf32> -> vector<32x128xf32>
    %c1_11 = arith.constant 1 : index
    %c0_12 = arith.constant 0 : index
    %c0_13 = arith.constant 0 : index
    %15 = vector.load %arg3[%c1_11, %c0_12, %c0_13] : memref<9x32x1xf32, #tpu.memory_space<vmem>>, vector<1x32x1xf32>
    %16 = vector.shape_cast %15 : vector<1x32x1xf32> to vector<32x1xf32>
    %17 = vector.broadcast %16 : vector<32x1xf32> to vector<32x128xf32>
    %18 = arith.addf %14, %17 : vector<32x128xf32>
    %cst_14 = arith.constant 0.00999999977 : f32
    %19 = vector.broadcast %cst_14 : f32 to vector<32x128xf32>
    %20 = arith.mulf %19, %18 : vector<32x128xf32>
    %21 = arith.maximumf %18, %20 : vector<32x128xf32>
    %22 = arith.truncf %21 : vector<32x128xf32> to vector<32x128xbf16>
    %c2 = arith.constant 2 : index
    %c0_15 = arith.constant 0 : index
    %c0_16 = arith.constant 0 : index
    %23 = vector.load %arg2[%c2, %c0_15, %c0_16] : memref<9x32x32xbf16, #tpu.memory_space<vmem>>, vector<1x32x32xbf16>
    %24 = vector.shape_cast %23 : vector<1x32x32xbf16> to vector<32x32xbf16>
    %cst_17 = arith.constant dense<0.000000e+00> : vector<32x128xf32>
    %25 = tpu.matmul %24, %22, %cst_17 {dimension_numbers = #tpu.dot_dimension_numbers<[1], [0], [0], [1], [0, 0, 1, 1], [], []>} : vector<32x32xbf16>, vector<32x128xbf16>, vector<32x128xf32> -> vector<32x128xf32>
    %c2_18 = arith.constant 2 : index
    %c0_19 = arith.constant 0 : index
    %c0_20 = arith.constant 0 : index
    %26 = vector.load %arg3[%c2_18, %c0_19, %c0_20] : memref<9x32x1xf32, #tpu.memory_space<vmem>>, vector<1x32x1xf32>
    %27 = vector.shape_cast %26 : vector<1x32x1xf32> to vector<32x1xf32>
    %28 = vector.broadcast %27 : vector<32x1xf32> to vector<32x128xf32>
    %29 = arith.addf %25, %28 : vector<32x128xf32>
    %cst_21 = arith.constant 0.00999999977 : f32
    %30 = vector.broadcast %cst_21 : f32 to vector<32x128xf32>
    %31 = arith.mulf %30, %29 : vector<32x128xf32>
    %32 = arith.maximumf %29, %31 : vector<32x128xf32>
    %33 = arith.truncf %32 : vector<32x128xf32> to vector<32x128xbf16>
    %c3 = arith.constant 3 : index
    %c0_22 = arith.constant 0 : index
    %c0_23 = arith.constant 0 : index
    %34 = vector.load %arg2[%c3, %c0_22, %c0_23] : memref<9x32x32xbf16, #tpu.memory_space<vmem>>, vector<1x32x32xbf16>
    %35 = vector.shape_cast %34 : vector<1x32x32xbf16> to vector<32x32xbf16>
    %cst_24 = arith.constant dense<0.000000e+00> : vector<32x128xf32>
    %36 = tpu.matmul %35, %33, %cst_24 {dimension_numbers = #tpu.dot_dimension_numbers<[1], [0], [0], [1], [0, 0, 1, 1], [], []>} : vector<32x32xbf16>, vector<32x128xbf16>, vector<32x128xf32> -> vector<32x128xf32>
    %c3_25 = arith.constant 3 : index
    %c0_26 = arith.constant 0 : index
    %c0_27 = arith.constant 0 : index
    %37 = vector.load %arg3[%c3_25, %c0_26, %c0_27] : memref<9x32x1xf32, #tpu.memory_space<vmem>>, vector<1x32x1xf32>
    %38 = vector.shape_cast %37 : vector<1x32x1xf32> to vector<32x1xf32>
    %39 = vector.broadcast %38 : vector<32x1xf32> to vector<32x128xf32>
    %40 = arith.addf %36, %39 : vector<32x128xf32>
    %cst_28 = arith.constant 0.00999999977 : f32
    %41 = vector.broadcast %cst_28 : f32 to vector<32x128xf32>
    %42 = arith.mulf %41, %40 : vector<32x128xf32>
    %43 = arith.maximumf %40, %42 : vector<32x128xf32>
    %44 = arith.truncf %43 : vector<32x128xf32> to vector<32x128xbf16>
    %c4 = arith.constant 4 : index
    %c0_29 = arith.constant 0 : index
    %c0_30 = arith.constant 0 : index
    %45 = vector.load %arg2[%c4, %c0_29, %c0_30] : memref<9x32x32xbf16, #tpu.memory_space<vmem>>, vector<1x32x32xbf16>
    %46 = vector.shape_cast %45 : vector<1x32x32xbf16> to vector<32x32xbf16>
    %cst_31 = arith.constant dense<0.000000e+00> : vector<32x128xf32>
    %47 = tpu.matmul %46, %44, %cst_31 {dimension_numbers = #tpu.dot_dimension_numbers<[1], [0], [0], [1], [0, 0, 1, 1], [], []>} : vector<32x32xbf16>, vector<32x128xbf16>, vector<32x128xf32> -> vector<32x128xf32>
    %c4_32 = arith.constant 4 : index
    %c0_33 = arith.constant 0 : index
    %c0_34 = arith.constant 0 : index
    %48 = vector.load %arg3[%c4_32, %c0_33, %c0_34] : memref<9x32x1xf32, #tpu.memory_space<vmem>>, vector<1x32x1xf32>
    %49 = vector.shape_cast %48 : vector<1x32x1xf32> to vector<32x1xf32>
    %50 = vector.broadcast %49 : vector<32x1xf32> to vector<32x128xf32>
    %51 = arith.addf %47, %50 : vector<32x128xf32>
    %cst_35 = arith.constant 0.00999999977 : f32
    %52 = vector.broadcast %cst_35 : f32 to vector<32x128xf32>
    %53 = arith.mulf %52, %51 : vector<32x128xf32>
    %54 = arith.maximumf %51, %53 : vector<32x128xf32>
    %55 = arith.truncf %54 : vector<32x128xf32> to vector<32x128xbf16>
    %c5 = arith.constant 5 : index
    %c0_36 = arith.constant 0 : index
    %c0_37 = arith.constant 0 : index
    %56 = vector.load %arg2[%c5, %c0_36, %c0_37] : memref<9x32x32xbf16, #tpu.memory_space<vmem>>, vector<1x32x32xbf16>
    %57 = vector.shape_cast %56 : vector<1x32x32xbf16> to vector<32x32xbf16>
    %cst_38 = arith.constant dense<0.000000e+00> : vector<32x128xf32>
    %58 = tpu.matmul %57, %55, %cst_38 {dimension_numbers = #tpu.dot_dimension_numbers<[1], [0], [0], [1], [0, 0, 1, 1], [], []>} : vector<32x32xbf16>, vector<32x128xbf16>, vector<32x128xf32> -> vector<32x128xf32>
    %c5_39 = arith.constant 5 : index
    %c0_40 = arith.constant 0 : index
    %c0_41 = arith.constant 0 : index
    %59 = vector.load %arg3[%c5_39, %c0_40, %c0_41] : memref<9x32x1xf32, #tpu.memory_space<vmem>>, vector<1x32x1xf32>
    %60 = vector.shape_cast %59 : vector<1x32x1xf32> to vector<32x1xf32>
    %61 = vector.broadcast %60 : vector<32x1xf32> to vector<32x128xf32>
    %62 = arith.addf %58, %61 : vector<32x128xf32>
    %cst_42 = arith.constant 0.00999999977 : f32
    %63 = vector.broadcast %cst_42 : f32 to vector<32x128xf32>
    %64 = arith.mulf %63, %62 : vector<32x128xf32>
    %65 = arith.maximumf %62, %64 : vector<32x128xf32>
    %66 = arith.truncf %65 : vector<32x128xf32> to vector<32x128xbf16>
    %c6 = arith.constant 6 : index
    %c0_43 = arith.constant 0 : index
    %c0_44 = arith.constant 0 : index
    %67 = vector.load %arg2[%c6, %c0_43, %c0_44] : memref<9x32x32xbf16, #tpu.memory_space<vmem>>, vector<1x32x32xbf16>
    %68 = vector.shape_cast %67 : vector<1x32x32xbf16> to vector<32x32xbf16>
    %cst_45 = arith.constant dense<0.000000e+00> : vector<32x128xf32>
    %69 = tpu.matmul %68, %66, %cst_45 {dimension_numbers = #tpu.dot_dimension_numbers<[1], [0], [0], [1], [0, 0, 1, 1], [], []>} : vector<32x32xbf16>, vector<32x128xbf16>, vector<32x128xf32> -> vector<32x128xf32>
    %c6_46 = arith.constant 6 : index
    %c0_47 = arith.constant 0 : index
    %c0_48 = arith.constant 0 : index
    %70 = vector.load %arg3[%c6_46, %c0_47, %c0_48] : memref<9x32x1xf32, #tpu.memory_space<vmem>>, vector<1x32x1xf32>
    %71 = vector.shape_cast %70 : vector<1x32x1xf32> to vector<32x1xf32>
    %72 = vector.broadcast %71 : vector<32x1xf32> to vector<32x128xf32>
    %73 = arith.addf %69, %72 : vector<32x128xf32>
    %cst_49 = arith.constant 0.00999999977 : f32
    %74 = vector.broadcast %cst_49 : f32 to vector<32x128xf32>
    %75 = arith.mulf %74, %73 : vector<32x128xf32>
    %76 = arith.maximumf %73, %75 : vector<32x128xf32>
    %77 = arith.truncf %76 : vector<32x128xf32> to vector<32x128xbf16>
    %c7 = arith.constant 7 : index
    %c0_50 = arith.constant 0 : index
    %c0_51 = arith.constant 0 : index
    %78 = vector.load %arg2[%c7, %c0_50, %c0_51] : memref<9x32x32xbf16, #tpu.memory_space<vmem>>, vector<1x32x32xbf16>
    %79 = vector.shape_cast %78 : vector<1x32x32xbf16> to vector<32x32xbf16>
    %cst_52 = arith.constant dense<0.000000e+00> : vector<32x128xf32>
    %80 = tpu.matmul %79, %77, %cst_52 {dimension_numbers = #tpu.dot_dimension_numbers<[1], [0], [0], [1], [0, 0, 1, 1], [], []>} : vector<32x32xbf16>, vector<32x128xbf16>, vector<32x128xf32> -> vector<32x128xf32>
    %c7_53 = arith.constant 7 : index
    %c0_54 = arith.constant 0 : index
    %c0_55 = arith.constant 0 : index
    %81 = vector.load %arg3[%c7_53, %c0_54, %c0_55] : memref<9x32x1xf32, #tpu.memory_space<vmem>>, vector<1x32x1xf32>
    %82 = vector.shape_cast %81 : vector<1x32x1xf32> to vector<32x1xf32>
    %83 = vector.broadcast %82 : vector<32x1xf32> to vector<32x128xf32>
    %84 = arith.addf %80, %83 : vector<32x128xf32>
    %cst_56 = arith.constant 0.00999999977 : f32
    %85 = vector.broadcast %cst_56 : f32 to vector<32x128xf32>
    %86 = arith.mulf %85, %84 : vector<32x128xf32>
    %87 = arith.maximumf %84, %86 : vector<32x128xf32>
    %88 = arith.truncf %87 : vector<32x128xf32> to vector<32x128xbf16>
    %c8 = arith.constant 8 : index
    %c0_57 = arith.constant 0 : index
    %c0_58 = arith.constant 0 : index
    %89 = vector.load %arg2[%c8, %c0_57, %c0_58] : memref<9x32x32xbf16, #tpu.memory_space<vmem>>, vector<1x32x32xbf16>
    %90 = vector.shape_cast %89 : vector<1x32x32xbf16> to vector<32x32xbf16>
    %91 = vector.extract_strided_slice %90 {offsets = [0, 0], sizes = [8, 32], strides = [1, 1]} : vector<32x32xbf16> to vector<8x32xbf16>
    %c8_59 = arith.constant 8 : index
    %c0_60 = arith.constant 0 : index
    %c0_61 = arith.constant 0 : index
    %92 = vector.load %arg3[%c8_59, %c0_60, %c0_61] : memref<9x32x1xf32, #tpu.memory_space<vmem>>, vector<1x32x1xf32>
    %93 = vector.shape_cast %92 : vector<1x32x1xf32> to vector<32x1xf32>
    %94 = vector.extract_strided_slice %93 {offsets = [0, 0], sizes = [8, 1], strides = [1, 1]} : vector<32x1xf32> to vector<8x1xf32>
    %cst_62 = arith.constant dense<0.000000e+00> : vector<8x128xf32>
    %95 = tpu.matmul %91, %88, %cst_62 {dimension_numbers = #tpu.dot_dimension_numbers<[1], [0], [0], [1], [0, 0, 1, 1], [], []>} : vector<8x32xbf16>, vector<32x128xbf16>, vector<8x128xf32> -> vector<8x128xf32>
    %96 = vector.broadcast %94 : vector<8x1xf32> to vector<8x128xf32>
    %97 = arith.addf %95, %96 : vector<8x128xf32>
    %c0_63 = arith.constant 0 : index
    %c0_64 = arith.constant 0 : index
    %98 = vector.load %arg4[%c0_63, %c0_64] : memref<8x128xf32, #tpu.memory_space<vmem>>, vector<8x128xf32>
    tpu.vector_store %arg4[%c0_63, %c0_64], %97 {strides = array<i32>} : memref<8x128xf32, #tpu.memory_space<vmem>>, vector<8x128xf32>,
    return
  }
  func.func @transform_0(%arg0: i32) -> (i32, i32) {
    %c0_i32 = arith.constant 0 : i32
    %c0_i32_0 = arith.constant 0 : i32
    return %c0_i32, %arg0 : i32, i32
  }
  func.func @transform_1(%arg0: i32) -> (i32, i32, i32) {
    %c0_i32 = arith.constant 0 : i32
    %c0_i32_0 = arith.constant 0 : i32
    %c0_i32_1 = arith.constant 0 : i32
    %c0_i32_2 = arith.constant 0 : i32
    return %c0_i32, %c0_i32_0, %c0_i32_1 : i32, i32, i32
  }
  func.func @transform_2(%arg0: i32) -> (i32, i32, i32) {
    %c0_i32 = arith.constant 0 : i32
    %c0_i32_0 = arith.constant 0 : i32
    %c0_i32_1 = arith.constant 0 : i32
    %c0_i32_2 = arith.constant 0 : i32
    return %c0_i32, %c0_i32_0, %c0_i32_1 : i32, i32, i32
  }
  func.func @transform_3(%arg0: i32) -> (i32, i32) {
    %c0_i32 = arith.constant 0 : i32
    %c0_i32_0 = arith.constant 0 : i32
    return %c0_i32, %arg0 : i32, i32
  }
}

</mosaic_0001>

<bundles_post_ra>
// kernel: dnn8_forward.1
= control target key start
LH: loop header
LB: loop body
LE: loop exit
PB: predicated region body
PF: predicated region fallthrough
CT: control target
= control target key end

     0   :  { %v1150_v1 = vmov 0   ;;  %vm69_vm0 = vcmask 261120   ;;  %vm1152_vm1 = vmmov 0   ;;  %s1349_s0 = inlined_call_operand.vmem [shape: bf16[32,128], index: 0, kind: input, shape index: {}]   ;;  %s1350_s1 = inlined_call_operand.vmem [shape: bf16[9,32,32], index: 1, kind: input, shape index: {}]   ;;  %s1351_s2 = inlined_call_operand.vmem [shape: f32[9,32,1], index: 2, kind: input, shape index: {}]   ;;  %s1352_s3 = inlined_call_operand.vmem [shape: f32[8,128], index: 3, kind: output, shape index: {}]  }
   0x1   :  { %v1132_v0 = vld [vmem:[%s1349_s0] sm:$0xff]   ;;  %1130 = vset.pattern.permute.xlu0 %v1150_v1  ;;  %1131 = vset.pattern.permute.xlu1 %v1150_v1  ;;  %v1133_v2 = vld [vmem:[%s1349_s0 + $0x8] sm:$0xff]   ;;  %v25_v5 = vld [vmem:[%s1351_s2 + $0x10] sm:$0xff] }
   0x2   :  { %1055 = vmatprep.subr.bf16.mxu0 %v1132_v0  ;;  %v1134_v3 = vld [vmem:[%s1350_s1] sm:$0xff]   ;;  %39 = vperm.xlu1 %1131, %v25_v5   ;;  %v1135_v6 = vld [vmem:[%s1350_s1 + $0x8] sm:$0xff]   ;;  %v26_v8 = vld [vmem:[%s1351_s2 + $0x18] sm:$0xff] }
   0x3   :  { %1056 = vmatpush3.bf16.msra.mxu0 %v1132_v0  ;;  %1059 = vmatprep.mubr.msk.bf16.mxu0 %vm69_vm0, %v1134_v3  ;;  %v23_v4 = vld [vmem:[%s1351_s2] sm:$0xff]  ;;  %v24_v7 = vld [vmem:[%s1351_s2 + $0x8] sm:$0xff]  ;;  %v939_v11 = vld [vmem:[%s1351_s2 + $0x30] sm:$0xff] }
   0x4   :  { %1057 = vmatprep.subr.bf16.mxu0 %v1133_v2  ;;  %29 = vperm.xlu0 %1130, %v23_v4   ;;  %v937_v9 = vld [vmem:[%s1351_s2 + $0x20] sm:$0xff]  ;;  %v938_v10 = vld [vmem:[%s1351_s2 + $0x28] sm:$0xff]  ;;  %v940_v12 = vld [vmem:[%s1351_s2 + $0x38] sm:$0xff] }
   0x5   :  { %v949_v13 = vld [vmem:[%s1351_s2 + $0x40] sm:$0xff]  ;;  %v950_v14 = vld [vmem:[%s1351_s2 + $0x48] sm:$0xff]  ;;  %v951_v15 = vld [vmem:[%s1351_s2 + $0x50] sm:$0xff] }
   0x6   :  { %44 = vperm.xlu1 %1131, %v26_v8   ;;  %v952_v16 = vld [vmem:[%s1351_s2 + $0x58] sm:$0xff]  ;;  %v961_v17 = vld [vmem:[%s1351_s2 + $0x60] sm:$0xff]  ;;  %v962_v18 = vld [vmem:[%s1351_s2 + $0x68] sm:$0xff] }
   0x7   :  { %1058 = vmatpush3.bf16.msra.mxu0 %v1133_v2  ;;  %v963_v19 = vld [vmem:[%s1351_s2 + $0x70] sm:$0xff]  ;;  %v964_v20 = vld [vmem:[%s1351_s2 + $0x78] sm:$0xff]  ;;  %v973_v21 = vld [vmem:[%s1351_s2 + $0x80] sm:$0xff] }
   0x8   :  { %34 = vperm.xlu0 %1130, %v24_v7   ;;  %v974_v22 = vld [vmem:[%s1351_s2 + $0x88] sm:$0xff]  ;;  %v975_v23 = vld [vmem:[%s1351_s2 + $0x90] sm:$0xff]  ;;  %v976_v24 = vld [vmem:[%s1351_s2 + $0x98] sm:$0xff] }
   0x9   :  { %v985_v25 = vld [vmem:[%s1351_s2 + $0xa0] sm:$0xff]  ;;  %v986_v26 = vld [vmem:[%s1351_s2 + $0xa8] sm:$0xff]  ;;  %v987_v27 = vld [vmem:[%s1351_s2 + $0xb0] sm:$0xff] }
   0xa   :  { %1060 = vmatmul.mubr.msk.bf16.vlgmr.msra.gmra.mrb[0].mxu0 %vm69_vm0, %v1135_v6  ;;  %152 = vperm.xlu1 %1131, %v938_v10   ;;  %v988_v28 = vld [vmem:[%s1351_s2 + $0xb8] sm:$0xff]  ;;  %v997_v29 = vld [vmem:[%s1351_s2 + $0xc0] sm:$0xff]  ;;  %v998_v30 = vld [vmem:[%s1351_s2 + $0xc8] sm:$0xff] }
   0xb   :  { %v999_v31 = vld [vmem:[%s1351_s2 + $0xd0] sm:$0xff]  ;;  %v1000_v32 = vld [vmem:[%s1351_s2 + $0xd8] sm:$0xff]  ;;  %v1009_v33 = vld [vmem:[%s1351_s2 + $0xe0] sm:$0xff] }
   0xc   :  { %147 = vperm.xlu0 %1130, %v937_v9   ;;  %v1010_v34 = vld [vmem:[%s1351_s2 + $0xe8] sm:$0xff]  ;;  %v1011_v35 = vld [vmem:[%s1351_s2 + $0xf0] sm:$0xff]  ;;  %v1012_v36 = vld [vmem:[%s1351_s2 + $0xf8] sm:$0xff] }
   0xd   :  { %v1018_v37 = vld [vmem:[%s1351_s2 + $0x100] sm:$0xff]  ;;  %v1136_v38 = vld [vmem:[%s1350_s1 + $0x10] sm:$0xff]   ;;  %v1137_v61 = vld [vmem:[%s1350_s1 + $0x18] sm:$0xff]  }
   0xe   :  { %162 = vperm.xlu1 %1131, %v940_v12   ;;  %1067 = vmatprep.mubr.msk.bf16.mxu1 %vm69_vm0, %v1136_v38  ;;  %v1138_v62 = vld [vmem:[%s1350_s1 + $0x20] sm:$0xff]  }
   0xf   :  { %1075 = vmatprep.mubr.msk.bf16.mxu0 %vm69_vm0, %v1138_v62 }
  0x10   :  { %157 = vperm.xlu0 %1130, %v939_v11  }
  0x12   :  { %257 = vperm.xlu1 %1131, %v950_v14  }
  0x14   :  { %252 = vperm.xlu0 %1130, %v949_v13  }
  0x16   :  { %267 = vperm.xlu1 %1131, %v952_v16  }
  0x18   :  { %262 = vperm.xlu0 %1130, %v951_v15  }
  0x1a   :  { %362 = vperm.xlu1 %1131, %v962_v18  }
  0x1c   :  { %357 = vperm.xlu0 %1130, %v961_v17  }
  0x1e   :  { %372 = vperm.xlu1 %1131, %v964_v20  }
  0x20   :  { %367 = vperm.xlu0 %1130, %v963_v19  }
  0x22   :  { %467 = vperm.xlu1 %1131, %v974_v22   ;;  %v1140_v22 = vld [vmem:[%s1350_s1 + $0x30] sm:$0xff]  }
  0x24   :  { %462 = vperm.xlu0 %1130, %v973_v21   ;;  %v1139_v21 = vld [vmem:[%s1350_s1 + $0x28] sm:$0xff]  }
  0x26   :  { %477 = vperm.xlu1 %1131, %v976_v24  }
  0x28   :  { %472 = vperm.xlu0 %1130, %v975_v23  }
  0x2a   :  { %572 = vperm.xlu1 %1131, %v986_v26  }
  0x2c   :  { %567 = vperm.xlu0 %1130, %v985_v25  }
  0x2e   :  { %582 = vperm.xlu1 %1131, %v988_v28  }
  0x30   :  { %577 = vperm.xlu0 %1130, %v987_v27  }
  0x32   :  { %677 = vperm.xlu1 %1131, %v998_v30  }
  0x34   :  { %672 = vperm.xlu0 %1130, %v997_v29  }
  0x36   :  { %687 = vperm.xlu1 %1131, %v1000_v32  }
  0x38   :  { %682 = vperm.xlu0 %1130, %v999_v31  }
  0x3a   :  { %782 = vperm.xlu1 %1131, %v1010_v34  }
  0x3c   :  { %777 = vperm.xlu0 %1130, %v1009_v33  }
  0x3e   :  { %792 = vperm.xlu1 %1131, %v1012_v36  }
  0x40   :  { %787 = vperm.xlu0 %1130, %v1011_v35  }
  0x44   :  { %876 = vperm.xlu0 %1130, %v1018_v37  }
  0x81   :  { %v40_v39 = vpop.permute.xlu1 %39 }
  0x83   :  { %v30_v40 = vpop.permute.xlu0 %29 }
  0x85   :  { %v45_v44 = vpop.permute.xlu1 %44 }
  0x87   :  { %v35_v47 = vpop.permute.xlu0 %34 }
  0x89   :  { %v153_v0 = vpop.permute.xlu1 %152 }
  0x8b   :  { %v148_v63 = vpop.permute.xlu0 %147 }
  0x8d   :  { %v163_v5 = vpop.permute.xlu1 %162 }
  0x8f   :  { %v158_v1 = vpop.permute.xlu0 %157 }
  0x91   :  { %v258_v24 = vpop.permute.xlu1 %257 }
  0x93   :  { %v253_v23 = vpop.permute.xlu0 %252 }
  0x95   :  { %v268_v29 = vpop.permute.xlu1 %267 }
  0x97   :  { %v263_v25 = vpop.permute.xlu0 %262 }
  0xdd   :  { %v1061_v41 = vpop.f32.mrb[0].mxu0 }
  0xde   :  { %v119_v42 = vadd.f32 %v1061_v41, %v40_v39  ;;  %v110_v43 = vpop.f32.mrb[1].mxu0 }
  0xdf   :  { %v111_v45 = vadd.f32 %v110_v43, %v30_v40  ;;  %v1062_v46 = vpop.f32.mrb[2].mxu0 }
  0xe0   :  { %v127_v48 = vmul.f32 0.01, %v119_v42  ;;  %v122_v49 = vadd.f32 %v1062_v46, %v45_v44  ;;  %v113_v50 = vpop.f32.mrb[3].mxu0  ;;  %v1142_v46 = vld [vmem:[%s1350_s1 + $0x40] sm:$0xff]  }
  0xe1   :  { %v125_v51 = vmul.f32 0.01, %v111_v45  ;;  %v114_v52 = vadd.f32 %v113_v50, %v35_v47  ;;  %v358_v47 = vpop.permute.xlu0 %357 }
  0xe2   :  { %v128_v53 = vmul.f32 0.01, %v122_v49  ;;  %v131_v55 = vmax.f32 %v119_v42, %v127_v48  ;;  %v363_v48 = vpop.permute.xlu1 %362 }
  0xe3   :  { %v126_v54 = vmul.f32 0.01, %v114_v52  ;;  %v129_v57 = vmax.f32 %v111_v45, %v125_v51  ;;  %v1141_v45 = vld [vmem:[%s1350_s1 + $0x38] sm:$0xff]  }
  0xe4   :  { %v132_v56 = vmax.f32 %v122_v49, %v128_v53 }
  0xe5   :  { %v130_v58 = vmax.f32 %v114_v52, %v126_v54  ;;  %v368_v49 = vpop.permute.xlu0 %367 }
  0xe6   :  { %v134_v59 = vpack.c.bf16 %v132_v56, %v131_v55  ;;  %v373_v53 = vpop.permute.xlu1 %372 }
  0xe7   :  { %v133_v60 = vpack.c.bf16 %v130_v58, %v129_v57 }
  0xe9   :  { %1063 = vmatprep.subr.bf16.mxu1 %v133_v60 }
  0xea   :  { %1064 = vmatpush3.bf16.msra.mxu1 %v133_v60 }
  0xeb   :  { %1065 = vmatprep.subr.bf16.mxu1 %v134_v59 }
  0xee   :  { %1066 = vmatpush3.bf16.msra.mxu1 %v134_v59 }
  0xf1   :  { %1068 = vmatmul.mubr.msk.bf16.vlgmr.msra.gmra.mrb[0].mxu1 %vm69_vm0, %v1137_v61 }
  0xf2   :  { %1083 = vmatprep.mubr.msk.bf16.mxu1 %vm69_vm0, %v1140_v22 }
 0x1c4   :  { %v1069_v2 = vpop.f32.mrb[0].mxu1 }
 0x1c5   :  { %v224_v3 = vadd.f32 %v1069_v2, %v158_v1  ;;  %v215_v4 = vpop.f32.mrb[1].mxu1 }
 0x1c6   :  { %v216_v6 = vadd.f32 %v215_v4, %v148_v63  ;;  %v1070_v7 = vpop.f32.mrb[2].mxu1 }
 0x1c7   :  { %v232_v8 = vmul.f32 0.01, %v224_v3  ;;  %v227_v9 = vadd.f32 %v1070_v7, %v163_v5  ;;  %v218_v10 = vpop.f32.mrb[3].mxu1  ;;  %v1143_v5 = vld [vmem:[%s1350_s1 + $0x48] sm:$0xff]   ;;  %v463_v7 = vpop.permute.xlu0 %462 }
 0x1c8   :  { %v230_v11 = vmul.f32 0.01, %v216_v6  ;;  %v219_v12 = vadd.f32 %v218_v10, %v153_v0 }
 0x1c9   :  { %v233_v13 = vmul.f32 0.01, %v227_v9  ;;  %v236_v15 = vmax.f32 %v224_v3, %v232_v8  ;;  %v468_v8 = vpop.permute.xlu1 %467 }
 0x1ca   :  { %v231_v14 = vmul.f32 0.01, %v219_v12  ;;  %v234_v17 = vmax.f32 %v216_v6, %v230_v11  ;;  %v1144_v6 = vld [vmem:[%s1350_s1 + $0x50] sm:$0xff]  }
 0x1cb   :  { %v237_v16 = vmax.f32 %v227_v9, %v233_v13  ;;  %v473_v9 = vpop.permute.xlu0 %472 }
 0x1cc   :  { %v235_v18 = vmax.f32 %v219_v12, %v231_v14 }
 0x1cd   :  { %v239_v19 = vpack.c.bf16 %v237_v16, %v236_v15  ;;  %v478_v13 = vpop.permute.xlu1 %477 }
 0x1ce   :  { %v238_v20 = vpack.c.bf16 %v235_v18, %v234_v17 }
 0x1d0   :  { %1071 = vmatprep.subr.bf16.mxu0 %v238_v20 }
 0x1d1   :  { %1072 = vmatpush3.bf16.msra.mxu0 %v238_v20 }
 0x1d2   :  { %1073 = vmatprep.subr.bf16.mxu0 %v239_v19 }
 0x1d5   :  { %1074 = vmatpush3.bf16.msra.mxu0 %v239_v19 }
 0x1d8   :  { %1076 = vmatmul.mubr.msk.bf16.vlgmr.msra.gmra.mrb[4].mxu0 %vm69_vm0, %v1139_v21 }
 0x1d9   :  { %1091 = vmatprep.mubr.msk.bf16.mxu0 %vm69_vm0, %v1142_v46 }
 0x2ab   :  { %v1077_v26 = vpop.f32.mrb[4].mxu0 }
 0x2ac   :  { %v329_v27 = vadd.f32 %v1077_v26, %v263_v25  ;;  %v320_v28 = vpop.f32.mrb[5].mxu0 }
 0x2ad   :  { %v321_v30 = vadd.f32 %v320_v28, %v253_v23  ;;  %v1078_v31 = vpop.f32.mrb[6].mxu0 }
 0x2ae   :  { %v337_v32 = vmul.f32 0.01, %v329_v27  ;;  %v332_v33 = vadd.f32 %v1078_v31, %v268_v29  ;;  %v323_v34 = vpop.f32.mrb[7].mxu0  ;;  %v1145_v29 = vld [vmem:[%s1350_s1 + $0x58] sm:$0xff]   ;;  %v568_v31 = vpop.permute.xlu0 %567 }
 0x2af   :  { %v335_v35 = vmul.f32 0.01, %v321_v30  ;;  %v324_v36 = vadd.f32 %v323_v34, %v258_v24 }
 0x2b0   :  { %v338_v37 = vmul.f32 0.01, %v332_v33  ;;  %v341_v39 = vmax.f32 %v329_v27, %v337_v32  ;;  %v573_v32 = vpop.permute.xlu1 %572 }
 0x2b1   :  { %v336_v38 = vmul.f32 0.01, %v324_v36  ;;  %v339_v41 = vmax.f32 %v321_v30, %v335_v35  ;;  %v1146_v30 = vld [vmem:[%s1350_s1 + $0x60] sm:$0xff]  }
 0x2b2   :  { %v342_v40 = vmax.f32 %v332_v33, %v338_v37  ;;  %v578_v33 = vpop.permute.xlu0 %577 }
 0x2b3   :  { %v340_v42 = vmax.f32 %v324_v36, %v336_v38 }
 0x2b4   :  { %v344_v43 = vpack.c.bf16 %v342_v40, %v341_v39  ;;  %v583_v37 = vpop.permute.xlu1 %582 }
 0x2b5   :  { %v343_v44 = vpack.c.bf16 %v340_v42, %v339_v41 }
 0x2b7   :  { %1079 = vmatprep.subr.bf16.mxu1 %v343_v44 }
 0x2b8   :  { %1080 = vmatpush3.bf16.msra.mxu1 %v343_v44 }
 0x2b9   :  { %1081 = vmatprep.subr.bf16.mxu1 %v344_v43 }
 0x2bc   :  { %1082 = vmatpush3.bf16.msra.mxu1 %v344_v43 }
 0x2bf   :  { %1084 = vmatmul.mubr.msk.bf16.vlgmr.msra.gmra.mrb[4].mxu1 %vm69_vm0, %v1141_v45 }
 0x2c0   :  { %1099 = vmatprep.mubr.msk.bf16.mxu1 %vm69_vm0, %v1144_v6 }
 0x392   :  { %v1085_v50 = vpop.f32.mrb[4].mxu1 }
 0x393   :  { %v434_v51 = vadd.f32 %v1085_v50, %v368_v49  ;;  %v425_v52 = vpop.f32.mrb[5].mxu1 }
 0x394   :  { %v426_v54 = vadd.f32 %v425_v52, %v358_v47  ;;  %v1086_v55 = vpop.f32.mrb[6].mxu1 }
 0x395   :  { %v442_v56 = vmul.f32 0.01, %v434_v51  ;;  %v437_v57 = vadd.f32 %v1086_v55, %v373_v53  ;;  %v428_v58 = vpop.f32.mrb[7].mxu1  ;;  %v1147_v53 = vld [vmem:[%s1350_s1 + $0x68] sm:$0xff]   ;;  %v673_v55 = vpop.permute.xlu0 %672 }
 0x396   :  { %v440_v59 = vmul.f32 0.01, %v426_v54  ;;  %v429_v60 = vadd.f32 %v428_v58, %v363_v48 }
 0x397   :  { %v443_v61 = vmul.f32 0.01, %v437_v57  ;;  %v446_v63 = vmax.f32 %v434_v51, %v442_v56  ;;  %v678_v56 = vpop.permute.xlu1 %677 }
 0x398   :  { %v441_v62 = vmul.f32 0.01, %v429_v60  ;;  %v444_v1 = vmax.f32 %v426_v54, %v440_v59  ;;  %v1148_v54 = vld [vmem:[%s1350_s1 + $0x70] sm:$0xff]  }
 0x399   :  { %v447_v0 = vmax.f32 %v437_v57, %v443_v61  ;;  %v683_v57 = vpop.permute.xlu0 %682 }
 0x39a   :  { %v445_v2 = vmax.f32 %v429_v60, %v441_v62 }
 0x39b   :  { %v449_v3 = vpack.c.bf16 %v447_v0, %v446_v63  ;;  %v688_v61 = vpop.permute.xlu1 %687 }
 0x39c   :  { %v448_v4 = vpack.c.bf16 %v445_v2, %v444_v1 }
 0x39e   :  { %1087 = vmatprep.subr.bf16.mxu0 %v448_v4 }
 0x39f   :  { %1088 = vmatpush3.bf16.msra.mxu0 %v448_v4 }
 0x3a0   :  { %1089 = vmatprep.subr.bf16.mxu0 %v449_v3 }
 0x3a3   :  { %1090 = vmatpush3.bf16.msra.mxu0 %v449_v3 }
 0x3a6   :  { %1092 = vmatmul.mubr.msk.bf16.vlgmr.msra.gmra.mrb[8].mxu0 %vm69_vm0, %v1143_v5 }
 0x3a7   :  { %1107 = vmatprep.mubr.msk.bf16.mxu0 %vm69_vm0, %v1146_v30 }
 0x479   :  { %v1093_v10 = vpop.f32.mrb[8].mxu0 }
 0x47a   :  { %v539_v11 = vadd.f32 %v1093_v10, %v473_v9  ;;  %v530_v12 = vpop.f32.mrb[9].mxu0 }
 0x47b   :  { %v531_v14 = vadd.f32 %v530_v12, %v463_v7  ;;  %v1094_v15 = vpop.f32.mrb[10].mxu0 }
 0x47c   :  { %v547_v16 = vmul.f32 0.01, %v539_v11  ;;  %v542_v17 = vadd.f32 %v1094_v15, %v478_v13  ;;  %v533_v18 = vpop.f32.mrb[11].mxu0  ;;  %v1149_v13 = vld [vmem:[%s1350_s1 + $0x78] sm:$0xff]   ;;  %v778_v15 = vpop.permute.xlu0 %777 }
 0x47d   :  { %v545_v19 = vmul.f32 0.01, %v531_v14  ;;  %v534_v20 = vadd.f32 %v533_v18, %v468_v8 }
 0x47e   :  { %v548_v21 = vmul.f32 0.01, %v542_v17  ;;  %v551_v23 = vmax.f32 %v539_v11, %v547_v16  ;;  %v783_v16 = vpop.permute.xlu1 %782 }
 0x47f   :  { %v546_v22 = vmul.f32 0.01, %v534_v20  ;;  %v549_v25 = vmax.f32 %v531_v14, %v545_v19  ;;  %v1151_v14 = vmov 0.0  }
 0x480   :  { %v552_v24 = vmax.f32 %v542_v17, %v548_v21  ;;  %v788_v17 = vpop.permute.xlu0 %787 }
 0x481   :  { %v550_v26 = vmax.f32 %v534_v20, %v546_v22 }
 0x482   :  { %v554_v27 = vpack.c.bf16 %v552_v24, %v551_v23  ;;  %v793_v21 = vpop.permute.xlu1 %792 }
 0x483   :  { %v553_v28 = vpack.c.bf16 %v550_v26, %v549_v25 }
 0x485   :  { %1095 = vmatprep.subr.bf16.mxu1 %v553_v28 }
 0x486   :  { %1096 = vmatpush3.bf16.msra.mxu1 %v553_v28 }
 0x487   :  { %1097 = vmatprep.subr.bf16.mxu1 %v554_v27 }
 0x48a   :  { %1098 = vmatpush3.bf16.msra.mxu1 %v554_v27 }
 0x48d   :  { %1100 = vmatmul.mubr.msk.bf16.vlgmr.msra.gmra.mrb[8].mxu1 %vm69_vm0, %v1145_v29 }
 0x48e   :  { %1115 = vmatprep.mubr.msk.bf16.mxu1 %vm69_vm0, %v1148_v54 }
 0x560   :  { %v1101_v34 = vpop.f32.mrb[8].mxu1 }
 0x561   :  { %v644_v35 = vadd.f32 %v1101_v34, %v578_v33  ;;  %v635_v36 = vpop.f32.mrb[9].mxu1 }
 0x562   :  { %v636_v38 = vadd.f32 %v635_v36, %v568_v31  ;;  %v1102_v39 = vpop.f32.mrb[10].mxu1 }
 0x563   :  { %v652_v40 = vmul.f32 0.01, %v644_v35  ;;  %v647_v41 = vadd.f32 %v1102_v39, %v583_v37  ;;  %v638_v42 = vpop.f32.mrb[11].mxu1  ;;  %v1017_v37 = vld [vmem:[%s1350_s1 + $0x80] sm:$0xf] }
 0x564   :  { %v650_v43 = vmul.f32 0.01, %v636_v38  ;;  %v639_v44 = vadd.f32 %v638_v42, %v573_v32 }
 0x565   :  { %v653_v45 = vmul.f32 0.01, %v647_v41  ;;  %v656_v47 = vmax.f32 %v644_v35, %v652_v40 }
 0x566   :  { %v651_v46 = vmul.f32 0.01, %v639_v44  ;;  %v654_v49 = vmax.f32 %v636_v38, %v650_v43  ;;  %v877_v38 = vpop.permute.xlu0 %876 }
 0x567   :  { %v657_v48 = vmax.f32 %v647_v41, %v653_v45 }
 0x568   :  { %v655_v50 = vmax.f32 %v639_v44, %v651_v46 }
 0x569   :  { %v659_v51 = vpack.c.bf16 %v657_v48, %v656_v47 }
 0x56a   :  { %v658_v52 = vpack.c.bf16 %v655_v50, %v654_v49 }
 0x56c   :  { %1103 = vmatprep.subr.bf16.mxu0 %v658_v52 }
 0x56d   :  { %1104 = vmatpush3.bf16.msra.mxu0 %v658_v52 }
 0x56e   :  { %1105 = vmatprep.subr.bf16.mxu0 %v659_v51 }
 0x571   :  { %1106 = vmatpush3.bf16.msra.mxu0 %v659_v51 }
 0x572   :  { %1119 = vmatprep.subr.bf16.mxu0 %v1151_v14 }
 0x574   :  { %1108 = vmatmul.mubr.msk.bf16.vlgmr.msra.gmra.mrb[12].mxu0 %vm69_vm0, %v1147_v53 }
 0x575   :  { %1123 = vmatprep.mubr.msk.bf16.mxu0 %vm1152_vm1, %v1151_v14 }
 0x647   :  { %v1109_v58 = vpop.f32.mrb[12].mxu0 }
 0x648   :  { %v749_v59 = vadd.f32 %v1109_v58, %v683_v57  ;;  %v740_v60 = vpop.f32.mrb[13].mxu0 }
 0x649   :  { %v741_v62 = vadd.f32 %v740_v60, %v673_v55  ;;  %v1110_v63 = vpop.f32.mrb[14].mxu0 }
 0x64a   :  { %v757_v0 = vmul.f32 0.01, %v749_v59  ;;  %v752_v1 = vadd.f32 %v1110_v63, %v688_v61  ;;  %v743_v2 = vpop.f32.mrb[15].mxu0 }
 0x64b   :  { %v755_v3 = vmul.f32 0.01, %v741_v62  ;;  %v744_v4 = vadd.f32 %v743_v2, %v678_v56 }
 0x64c   :  { %v758_v5 = vmul.f32 0.01, %v752_v1  ;;  %v761_v7 = vmax.f32 %v749_v59, %v757_v0 }
 0x64d   :  { %v756_v6 = vmul.f32 0.01, %v744_v4  ;;  %v759_v9 = vmax.f32 %v741_v62, %v755_v3 }
 0x64e   :  { %v762_v8 = vmax.f32 %v752_v1, %v758_v5 }
 0x64f   :  { %v760_v10 = vmax.f32 %v744_v4, %v756_v6 }
 0x650   :  { %v764_v11 = vpack.c.bf16 %v762_v8, %v761_v7 }
 0x651   :  { %v763_v12 = vpack.c.bf16 %v760_v10, %v759_v9 }
 0x653   :  { %1111 = vmatprep.subr.bf16.mxu1 %v763_v12 }
 0x654   :  { %1112 = vmatpush3.bf16.msra.mxu1 %v763_v12 }
 0x655   :  { %1113 = vmatprep.subr.bf16.mxu1 %v764_v11 }
 0x658   :  { %1114 = vmatpush3.bf16.msra.mxu1 %v764_v11 }
 0x65b   :  { %1116 = vmatmul.mubr.msk.bf16.vlgmr.msra.gmra.mrb[12].mxu1 %vm69_vm0, %v1149_v13 }
 0x72e   :  { %v1117_v18 = vpop.f32.mrb[12].mxu1 }
 0x72f   :  { %v854_v19 = vadd.f32 %v1117_v18, %v788_v17  ;;  %v845_v20 = vpop.f32.mrb[13].mxu1 }
 0x730   :  { %v846_v22 = vadd.f32 %v845_v20, %v778_v15  ;;  %v1118_v23 = vpop.f32.mrb[14].mxu1 }
 0x731   :  { %v862_v24 = vmul.f32 0.01, %v854_v19  ;;  %v857_v25 = vadd.f32 %v1118_v23, %v793_v21  ;;  %v848_v26 = vpop.f32.mrb[15].mxu1 }
 0x732   :  { %v860_v27 = vmul.f32 0.01, %v846_v22  ;;  %v849_v28 = vadd.f32 %v848_v26, %v783_v16 }
 0x733   :  { %v863_v29 = vmul.f32 0.01, %v857_v25  ;;  %v866_v31 = vmax.f32 %v854_v19, %v862_v24 }
 0x734   :  { %v861_v30 = vmul.f32 0.01, %v849_v28  ;;  %v864_v33 = vmax.f32 %v846_v22, %v860_v27 }
 0x735   :  { %v867_v32 = vmax.f32 %v857_v25, %v863_v29 }
 0x736   :  { %v865_v34 = vmax.f32 %v849_v28, %v861_v30 }
 0x737   :  { %v869_v35 = vpack.c.bf16 %v867_v32, %v866_v31 }
 0x738   :  { %v868_v36 = vpack.c.bf16 %v865_v34, %v864_v33 }
 0x73a   :  { %1120 = vmatpush3.bf16.msra.mxu0 %v868_v36 }
 0x73b   :  { %1121 = vmatprep.subr.bf16.mxu0 %v1151_v14 }
 0x73e   :  { %1122 = vmatpush3.bf16.msra.mxu0 %v869_v35 }
 0x741   :  { %1124 = vmatmul.mubr.msk.bf16.vlgmr.msra.gmra.mrb[16].mxu0 %vm69_vm0, %v1017_v37 }
 0x814   :  { %v916_v39 = vpop.f32.mrb[16].mxu0 }
 0x815   :  { %v917_v40 = vadd.f32 %v916_v39, %v877_v38  ;;  %v1125_v41 = vpop.f32.mrb[17].mxu0 }
 0x816   :  { %v919_v42 = vpop.f32.mrb[18].mxu0 }
 0x817   :  { %922 = vst [vmem:[%s1352_s3] sm:$0xff] %v917_v40  ;;  %v1126_v43 = vpop.f32.mrb[19].mxu0 }

</bundles_post_ra>
